<compile_context>
chip_gen: v5e
topology: v5e:2x2
jax: 0.10.0
libtpu: 0.0.40
codegen_flags: <defaults>
</compile_context>

<pallas_src>
import functools

import jax
import jax.numpy as jnp
from jax import lax
from jax.experimental import pallas as pl
from jax.experimental.pallas import tpu as pltpu


def _round_up(x, m):
    return (x + m - 1) // m * m


def _triple(v):
    if isinstance(v, (tuple, list)):
        return tuple(v)
    return (v, v, v)


_VMEM_LIMIT = 32 * 1024 * 1024  # explicit budget; valid on v5e/v6e/v7x


# ---------------------------------------------------------------------------
# Pallas kernel 1: tiled MXU matmul, bf16 operands, f32 accumulation, with a
# fused (folded-BN) affine + optional ReLU epilogue:
#   out = act( (X @ W) * scale + bias )
# ---------------------------------------------------------------------------
def _mm_affine_kernel(x_ref, w_ref, s_ref, b_ref, o_ref, acc_ref, *, nk, relu):
    @pl.when(pl.program_id(2) == 0)
    def _():
        acc_ref[...] = jnp.zeros_like(acc_ref)

    acc_ref[...] += jnp.dot(x_ref[...], w_ref[...],
                            preferred_element_type=jnp.float32)

    @pl.when(pl.program_id(2) == nk - 1)
    def _():
        y = acc_ref[...] * s_ref[...] + b_ref[...]
        if relu:
            y = jnp.maximum(y, 0.0)
        o_ref[...] = y.astype(o_ref.dtype)


@functools.lru_cache(maxsize=None)
def _build_mm(Mp, Kp, Np, tm, tk, tn, relu, out_dtype):
    nk = Kp // tk
    return pl.pallas_call(
        functools.partial(_mm_affine_kernel, nk=nk, relu=relu),
        out_shape=jax.ShapeDtypeStruct((Mp, Np), out_dtype),
        grid_spec=pltpu.PrefetchScalarGridSpec(
            num_scalar_prefetch=0,
            grid=(Mp // tm, Np // tn, nk),
            in_specs=[
                pl.BlockSpec((tm, tk), lambda i, j, k: (i, k)),
                pl.BlockSpec((tk, tn), lambda i, j, k: (k, j)),
                # scale/bias block index is k-invariant -> the pipeline does
                # not re-DMA them across the inner K steps.
                pl.BlockSpec((1, tn), lambda i, j, k: (0, j)),
                pl.BlockSpec((1, tn), lambda i, j, k: (0, j)),
            ],
            out_specs=pl.BlockSpec((tm, tn), lambda i, j, k: (i, j)),
            scratch_shapes=[pltpu.VMEM((tm, tn), jnp.float32)],
        ),
        compiler_params=pltpu.CompilerParams(
            dimension_semantics=("parallel", "parallel", "arbitrary"),
            vmem_limit_bytes=_VMEM_LIMIT),
    )


def _mm_tiles(M, K, N):
    # M tile (bf16 sublane packing -> multiples of 16); single M step when
    # M <= 512 (most deep-layer GEMMs have M in {1, 27, 343}).
    if M > 512:
        tm = 512
    else:
        tm = max(16, _round_up(M, 16))
    # N tile: 256-wide when it tiles cleanly (fills the v6e/v7x 256x256 MXU).
    tn = 256 if _round_up(N, 128) % 256 == 0 else 128
    Np = _round_up(N, tn)
    # K tile: collapse the K loop to one grid step whenever the whole K fits
    # comfortably (kills per-step pipeline overhead on tiny GEMMs).
    Kp = _round_up(K, 128)
    if Kp <= 2048:
        tk = Kp
    else:
        tk = 512
        Kp = _round_up(K, 512)

    # VMEM working-set guard (double-buffered bf16 inputs + f32 acc + out),
    # keeps tiles safe on v7x's smaller VMEM as well.
    def wset(tm_):
        return 2 * (tm_ * tk + tk * tn) * 2 + tm_ * tn * 4 + 2 * tm_ * tn * 2

    while tm > 64 and wset(tm) > 24 * 1024 * 1024:
        tm //= 2
    Mp = _round_up(M, tm)
    return tm, tk, tn, Mp, Kp, Np


def matmul_affine(x, w, scale, bias, relu, out_dtype=jnp.bfloat16):
    """act((x @ w) * scale + bias); bf16 operands, f32 accumulation."""
    M, K = x.shape
    K2, N = w.shape
    assert K == K2
    tm, tk, tn, Mp, Kp, Np = _mm_tiles(M, K, N)
    xp = x.astype(jnp.bfloat16)
    wp = w.astype(jnp.bfloat16)
    if (Mp, Kp) != (M, K):
        xp = jnp.pad(xp, ((0, Mp - M), (0, Kp - K)))
    if (Kp, Np) != (K, N):
        wp = jnp.pad(wp, ((0, Kp - K), (0, Np - N)))
    sp = jnp.pad(scale.astype(jnp.float32).reshape(1, N), ((0, 0), (0, Np - N)))
    bp = jnp.pad(bias.astype(jnp.float32).reshape(1, N), ((0, 0), (0, Np - N)))
    out = _build_mm(Mp, Kp, Np, tm, tk, tn, bool(relu), out_dtype)(xp, wp, sp, bp)
    if (Mp, Np) != (M, N):
        out = out[:M, :N]
    return out


# ---------------------------------------------------------------------------
# Pallas kernel 2: 3-tap window reduction (max / sum) along the middle axis of
# a (R, L, F) view.  Taps are read in-kernel from one block (no stacked patch
# tensor); 3x3x3 pools are applied as separable W/H/D passes.
# ---------------------------------------------------------------------------
def _pool3_kernel(x_ref, o_ref, *, op):
    ol = o_ref.shape[1]
    a = x_ref[:, 0:ol, :]
    b = x_ref[:, 1:ol + 1, :]
    c = x_ref[:, 2:ol + 2, :]
    if op == "max":
        o_ref[...] = jnp.maximum(jnp.maximum(a, b), c)
    else:  # "sum", accumulated in f32
        o_ref[...] = (a.astype(jnp.float32) + b.astype(jnp.float32)
                      + c.astype(jnp.float32)).astype(o_ref.dtype)


@functools.lru_cache(maxsize=None)
def _build_pool3(Rp, L, F, tr, tf, op, dtype):
    return pl.pallas_call(
        functools.partial(_pool3_kernel, op=op),
        out_shape=jax.ShapeDtypeStruct((Rp, L - 2, F), dtype),
        grid_spec=pltpu.PrefetchScalarGridSpec(
            num_scalar_prefetch=0,
            grid=(Rp // tr, F // tf),
            in_specs=[pl.BlockSpec((tr, L, tf), lambda i, j: (i, 0, j))],
            out_specs=pl.BlockSpec((tr, L - 2, tf), lambda i, j: (i, 0, j)),
        ),
        compiler_params=pltpu.CompilerParams(
            dimension_semantics=("parallel", "parallel"),
            vmem_limit_bytes=_VMEM_LIMIT),
    )


def pool3_reduce(x3, op):
    R, L, F = x3.shape
    budget = 1 << 20  # ~1M elems per block (~2 MiB in bf16)
    if L * F <= budget:
        tf = F
    else:
        for cand in (512, 384, 256, 128):
            if F % cand == 0:
                tf = cand
                break
        else:
            tf = F
    tr = max(1, min(R, 256, budget // (L * tf)))
    if tr < R:
        tr = max(8, (tr // 8) * 8)
    Rp = _round_up(R, tr)
    if Rp != R:
        x3 = jnp.pad(x3, ((0, Rp - R), (0, 0), (0, 0)))
    out = _build_pool3(Rp, L, F, tr, tf, op, x3.dtype)(x3)
    if Rp != R:
        out = out[:R]
    return out


def _pool_pass(x, axis, op, pad):
    """One separable 3-tap pass (stride 1) along `axis` of an NDHWC tensor."""
    if pad:
        cfg = [(0, 0)] * x.ndim
        cfg[axis] = (1, 1)
        x = jnp.pad(x, cfg)
    shp = x.shape
    R = 1
    for s in shp[:axis]:
        R *= s
    F = 1
    for s in shp[axis + 1:]:
        F *= s
    L = shp[axis]
    y = pool3_reduce(x.reshape(R, L, F), op)
    return y.reshape(shp[:axis] + (L - 2,) + shp[axis + 1:])


def max_pool3d_s2(x):
    """MaxPool3d(kernel=3, stride=2, padding=0), separable per-axis passes."""
    for axis in (3, 2, 1):
        x = _pool_pass(x, axis, "max", pad=False)
        x = lax.slice_in_dim(x, 0, x.shape[axis], 2, axis=axis)
    return x


def _avgpool_counts(S):
    idx = jnp.arange(S)
    lo = jnp.maximum(idx - 1, 0)
    hi = jnp.minimum(idx + 1, S - 1)
    return (hi - lo + 1).astype(jnp.float32)


def avg_pool3d_k3s1p1(x):
    """AvgPool3d(3, stride=1, padding=1, count_include_pad=False)."""
    n, D, H, W, C = x.shape
    dtype = x.dtype
    for axis in (3, 2, 1):
        x = _pool_pass(x, axis, "sum", pad=True)
    counts = (_avgpool_counts(D)[:, None, None]
              * _avgpool_counts(H)[None, :, None]
              * _avgpool_counts(W)[None, None, :])
    return (x.astype(jnp.float32) / counts[None, :, :, :, None]).astype(dtype)


# ---------------------------------------------------------------------------
# JAX glue: im2col window extraction and conv wrappers
# ---------------------------------------------------------------------------
def _window_slices(x, ksize, stride, padding):
    """x: (N,D,H,W,C) -> list of KD*KH*KW shifted views, each (N,OD,OH,OW,C)."""
    kd, kh, kw = ksize
    sd, sh, sw = stride
    pd, ph, pw = padding
    n, D, H, W, C = x.shape
    xp = x
    if pd or ph or pw:
        xp = jnp.pad(x, ((0, 0), (pd, pd), (ph, ph), (pw, pw), (0, 0)))
    OD = (D + 2 * pd - kd) // sd + 1
    OH = (H + 2 * ph - kh) // sh + 1
    OW = (W + 2 * pw - kw) // sw + 1
    outs = []
    for a in range(kd):
        for b in range(kh):
            for c in range(kw):
                s = xp[:,
                       a:a + (OD - 1) * sd + 1:sd,
                       b:b + (OH - 1) * sh + 1:sh,
                       c:c + (OW - 1) * sw + 1:sw, :]
                outs.append(s)
    return outs, (OD, OH, OW)


def conv3d_bn_relu(x, w, scale, bias, stride, padding, relu=True):
    """x: (N,D,H,W,Cin) bf16; w: (Cout,Cin,kd,kh,kw) (PyTorch layout)."""
    cout, cin, kd, kh, kw = w.shape
    n = x.shape[0]
    assert x.shape[-1] == cin
    if (kd, kh, kw) == (1, 1, 1) and stride == (1, 1, 1):
        OD, OH, OW = x.shape[1], x.shape[2], x.shape[3]
        patches = x.reshape(n * OD * OH * OW, cin)  # no im2col copy
        wm = w.reshape(cout, cin).T
    else:
        outs, (OD, OH, OW) = _window_slices(x, (kd, kh, kw), stride, padding)
        patches = jnp.concatenate(outs, axis=-1).reshape(
            n * OD * OH * OW, kd * kh * kw * cin)
        wm = jnp.transpose(w, (2, 3, 4, 1, 0)).reshape(kd * kh * kw * cin, cout)
    y = matmul_affine(patches, wm, scale, bias, relu)
    return y.reshape(n, OD, OH, OW, cout)


# ---------------------------------------------------------------------------
# Deterministic parameter generation + network definition
# ---------------------------------------------------------------------------
class ParamGen:
    def __init__(self, seed):
        self.key = jax.random.PRNGKey(seed)
        self.i = 0

    def next_key(self):
        self.i += 1
        return jax.random.fold_in(self.key, self.i)


def _bn_affine(cout):
    # BatchNorm3d(eps=1e-3) at PyTorch default init, eval mode, folded.
    gamma = jnp.ones((cout,), jnp.float32)
    beta = jnp.zeros((cout,), jnp.float32)
    mean = jnp.zeros((cout,), jnp.float32)
    var = jnp.ones((cout,), jnp.float32)
    scale = gamma / jnp.sqrt(var + 1e-3)
    bias = beta - mean * scale
    return scale, bias


def basic_conv3d(pg, x, cin, cout, k, s=1, p=0):
    """BasicConv3d: Conv3d(bias=False) + BatchNorm3d(eps=1e-3, eval) + ReLU."""
    k3, s3, p3 = _triple(k), _triple(s), _triple(p)
    assert x.shape[-1] == cin
    fan_in = cin * k3[0] * k3[1] * k3[2]
    w = jax.random.normal(pg.next_key(), (cout, cin) + k3,
                          jnp.float32) * (1.0 / (fan_in ** 0.5))
    scale, bias = _bn_affine(cout)
    return conv3d_bn_relu(x, w, scale, bias, s3, p3, relu=True)


def fused_conv1x1(pg, x, cin, cout_list):
    """Several 1x1x1 BasicConv3d branches on the same input -> one wide GEMM."""
    assert x.shape[-1] == cin
    n, OD, OH, OW, _ = x.shape
    wms, scales, biases = [], [], []
    for cout in cout_list:
        w = jax.random.normal(pg.next_key(), (cout, cin, 1, 1, 1),
                              jnp.float32) * (1.0 / (cin ** 0.5))
        wms.append(w.reshape(cout, cin).T)
        s, b = _bn_affine(cout)
        scales.append(s)
        biases.append(b)
    wm = jnp.concatenate(wms, axis=1)
    scale = jnp.concatenate(scales)
    bias = jnp.concatenate(biases)
    patches = x.reshape(n * OD * OH * OW, cin)
    y = matmul_affine(patches, wm, scale, bias, relu=True)
    y = y.reshape(n, OD, OH, OW, sum(cout_list))
    outs, off = [], 0
    for cout in cout_list:
        outs.append(y[..., off:off + cout])
        off += cout
    return outs


def mixed3a(pg, x):
    x0 = max_pool3d_s2(x)
    x1 = basic_conv3d(pg, x, 64, 96, 3, 2)
    return jnp.concatenate([x0, x1], axis=-1)


def mixed4a(pg, x):
    b0, b1 = fused_conv1x1(pg, x, 160, [64, 64])
    b0 = basic_conv3d(pg, b0, 64, 96, 3, 1)
    b1 = basic_conv3d(pg, b1, 64, 64, (1, 1, 7), 1, (0, 0, 3))
    b1 = basic_conv3d(pg, b1, 64, 64, (1, 7, 1), 1, (0, 3, 0))
    b1 = basic_conv3d(pg, b1, 64, 96, (3, 3, 3), 1)
    return jnp.concatenate([b0, b1], axis=-1)


def mixed5a(pg, x):
    x0 = basic_conv3d(pg, x, 192, 192, 3, 2)
    x1 = max_pool3d_s2(x)
    return jnp.concatenate([x0, x1], axis=-1)


def inception_a(pg, x):
    b0, b1, b2 = fused_conv1x1(pg, x, 384, [96, 64, 64])
    b1 = basic_conv3d(pg, b1, 64, 96, 3, 1, 1)
    b2 = basic_conv3d(pg, b2, 64, 96, 3, 1, 1)
    b2 = basic_conv3d(pg, b2, 96, 96, 3, 1, 1)
    b3 = avg_pool3d_k3s1p1(x)
    b3 = basic_conv3d(pg, b3, 384, 96, 1, 1)
    return jnp.concatenate([b0, b1, b2, b3], axis=-1)


def reduction_a(pg, x):
    b0 = basic_conv3d(pg, x, 384, 384, 3, 2)
    b1 = basic_conv3d(pg, x, 384, 192, 1, 1)
    b1 = basic_conv3d(pg, b1, 192, 224, 3, 1, 1)
    b1 = basic_conv3d(pg, b1, 224, 256, 3, 2)
    b2 = max_pool3d_s2(x)
    return jnp.concatenate([b0, b1, b2], axis=-1)


def inception_b(pg, x):
    b0, b1, b2 = fused_conv1x1(pg, x, 1024, [384, 192, 192])
    b1 = basic_conv3d(pg, b1, 192, 224, (1, 1, 7), 1, (0, 0, 3))
    b1 = basic_conv3d(pg, b1, 224, 256, (1, 7, 1), 1, (0, 3, 0))
    b2 = basic_conv3d(pg, b2, 192, 192, (1, 7, 1), 1, (0, 3, 0))
    b2 = basic_conv3d(pg, b2, 192, 224, (1, 1, 7), 1, (0, 0, 3))
    b2 = basic_conv3d(pg, b2, 224, 224, (1, 7, 1), 1, (0, 3, 0))
    b2 = basic_conv3d(pg, b2, 224, 256, (1, 1, 7), 1, (0, 0, 3))
    b3 = avg_pool3d_k3s1p1(x)
    b3 = basic_conv3d(pg, b3, 1024, 128, 1, 1)
    return jnp.concatenate([b0, b1, b2, b3], axis=-1)


def reduction_b(pg, x):
    b0, b1 = fused_conv1x1(pg, x, 1024, [192, 256])
    b0 = basic_conv3d(pg, b0, 192, 192, 3, 2)
    b1 = basic_conv3d(pg, b1, 256, 256, (1, 1, 7), 1, (0, 0, 3))
    b1 = basic_conv3d(pg, b1, 256, 320, (1, 7, 1), 1, (0, 3, 0))
    b1 = basic_conv3d(pg, b1, 320, 320, 3, 2)
    b2 = max_pool3d_s2(x)
    return jnp.concatenate([b0, b1, b2], axis=-1)


def inception_c(pg, x):
    b0, b1_0, b2_0 = fused_conv1x1(pg, x, 1536, [256, 384, 384])
    b1a = basic_conv3d(pg, b1_0, 384, 256, (1, 1, 3), 1, (0, 0, 1))
    b1b = basic_conv3d(pg, b1_0, 384, 256, (1, 3, 1), 1, (0, 1, 0))
    b1 = jnp.concatenate([b1a, b1b], axis=-1)
    b2_1 = basic_conv3d(pg, b2_0, 384, 448, (1, 3, 1), 1, (0, 1, 0))
    b2_2 = basic_conv3d(pg, b2_1, 448, 512, (1, 1, 3), 1, (0, 0, 1))
    b2a = basic_conv3d(pg, b2_2, 512, 256, (1, 1, 3), 1, (0, 0, 1))
    b2b = basic_conv3d(pg, b2_2, 512, 256, (1, 3, 1), 1, (0, 1, 0))
    b2 = jnp.concatenate([b2a, b2b], axis=-1)
    b3 = avg_pool3d_k3s1p1(x)
    b3 = basic_conv3d(pg, b3, 1536, 256, 1, 1)
    return jnp.concatenate([b0, b1, b2, b3], axis=-1)


def inception_v4_forward(x_ncdhw, num_classes=1000, in_channels=3, param_seed=1):
    pg = ParamGen(param_seed)
    # NCDHW -> NDHWC, bf16 activations end-to-end.
    x = jnp.transpose(x_ncdhw, (0, 2, 3, 4, 1)).astype(jnp.bfloat16)

    # stem
    x = basic_conv3d(pg, x, in_channels, 32, 3, 2)
    x = basic_conv3d(pg, x, 32, 32, 3, 1)
    x = basic_conv3d(pg, x, 32, 64, 3, 1, 1)
    x = mixed3a(pg, x)
    x = mixed4a(pg, x)
    x = mixed5a(pg, x)
    for _ in range(4):
        x = inception_a(pg, x)
    x = reduction_a(pg, x)
    for _ in range(7):
        x = inception_b(pg, x)
    x = reduction_b(pg, x)
    for _ in range(3):
        x = inception_c(pg, x)

    # AdaptiveAvgPool3d((1,1,1)) + flatten (trivial reduction -> plain JAX)
    feat = jnp.mean(x.astype(jnp.float32), axis=(1, 2, 3))  # (N, 1536)

    # fc: Linear(1536, num_classes) via the same Pallas matmul kernel.
    w_fc = jax.random.normal(pg.next_key(), (num_classes, 1536),
                             jnp.float32) * (1.0 / (1536.0 ** 0.5))
    b_fc = jax.random.normal(pg.next_key(), (num_classes,), jnp.float32) * 0.01
    logits = matmul_affine(feat, w_fc.T,
                           jnp.ones((num_classes,), jnp.float32), b_fc,
                           relu=False, out_dtype=jnp.float32)
    return logits


if __name__ == "__main__":
    # 75 is the minimum spatial extent (per D/H/W) accepted by the stem and the
    # stride-2 valid-padding reductions of this architecture.
    key = jax.random.PRNGKey(0)
    x = jax.random.normal(key, (1, 3, 75, 75, 75), jnp.float32)  # NCDHW
    logits = inception_v4_forward(x, num_classes=1000, in_channels=3)
    logits = jax.block_until_ready(logits)
    assert logits.shape == (1, 1000)
    assert bool(jnp.all(jnp.isfinite(logits)))
    print("KERNEL_OK")
</pallas_src>

<mosaic_0001>
module attributes {stable_mosaic.version = 11 : i64} {
  func.func @_mm_affine_kernel(%arg0: i32, %arg1: i32, %arg2: i32, %arg3: memref<512x128xbf16, #tpu.memory_space<vmem>>, %arg4: memref<128x128xbf16, #tpu.memory_space<vmem>>, %arg5: memref<1x128xf32, #tpu.memory_space<vmem>>, %arg6: memref<1x128xf32, #tpu.memory_space<vmem>>, %arg7: memref<512x128xbf16, #tpu.memory_space<vmem>>, %arg8: memref<512x128xf32, #tpu.memory_space<vmem>>) attributes {dimension_semantics = [#tpu.dimension_semantics<parallel>, #tpu.dimension_semantics<parallel>, #tpu.dimension_semantics<arbitrary>], iteration_bounds = array<i64: 99, 1, 1>, scalar_prefetch = 0 : i64, scratch_operands = 1 : i64, tpu.core_type = #tpu.core_type<tc>, window_params = [{transform_indices = @transform_0, window_bounds = array<i64: 512, 128>}, {transform_indices = @transform_1, window_bounds = array<i64: 128, 128>}, {transform_indices = @transform_2, window_bounds = array<i64: 1, 128>}, {transform_indices = @transform_3, window_bounds = array<i64: 1, 128>}, {transform_indices = @transform_4, window_bounds = array<i64: 512, 128>}]} {
    %c0_i32 = arith.constant 0 : i32
    %0 = arith.cmpi eq, %arg2, %c0_i32 : i32
    %1 = arith.extui %0 : i1 to i32
    %c0_i32_0 = arith.constant 0 : i32
    %2 = arith.cmpi ne, %1, %c0_i32_0 : i32
    scf.if %2 {
      %cst_10 = arith.constant 0.000000e+00 : f32
      %12 = vector.broadcast %cst_10 : f32 to vector<512x128xf32>
      %c0_11 = arith.constant 0 : index
      %c0_12 = arith.constant 0 : index
      %13 = vector.load %arg8[%c0_11, %c0_12] : memref<512x128xf32, #tpu.memory_space<vmem>>, vector<512x128xf32>
      tpu.vector_store %arg8[%c0_11, %c0_12], %12 {strides = array<i32>} : memref<512x128xf32, #tpu.memory_space<vmem>>, vector<512x128xf32>,
    } else {
    }
    %c0 = arith.constant 0 : index
    %c0_1 = arith.constant 0 : index
    %3 = vector.load %arg8[%c0, %c0_1] : memref<512x128xf32, #tpu.memory_space<vmem>>, vector<512x128xf32>
    %c0_2 = arith.constant 0 : index
    %c0_3 = arith.constant 0 : index
    %4 = vector.load %arg3[%c0_2, %c0_3] : memref<512x128xbf16, #tpu.memory_space<vmem>>, vector<512x128xbf16>
    %c0_4 = arith.constant 0 : index
    %c0_5 = arith.constant 0 : index
    %5 = vector.load %arg4[%c0_4, %c0_5] : memref<128x128xbf16, #tpu.memory_space<vmem>>, vector<128x128xbf16>
    %cst = arith.constant dense<0.000000e+00> : vector<512x128xf32>
    %6 = tpu.matmul %4, %5, %cst {dimension_numbers = #tpu.dot_dimension_numbers<[1], [0], [0], [1], [0, 0, 1, 1], [], []>} : vector<512x128xbf16>, vector<128x128xbf16>, vector<512x128xf32> -> vector<512x128xf32>
    %7 = arith.addf %3, %6 : vector<512x128xf32>
    %c0_6 = arith.constant 0 : index
    %c0_7 = arith.constant 0 : index
    %8 = vector.load %arg8[%c0_6, %c0_7] : memref<512x128xf32, #tpu.memory_space<vmem>>, vector<512x128xf32>
    tpu.vector_store %arg8[%c0_6, %c0_7], %7 {strides = array<i32>} : memref<512x128xf32, #tpu.memory_space<vmem>>, vector<512x128xf32>,
    %c0_i32_8 = arith.constant 0 : i32
    %9 = arith.cmpi eq, %arg2, %c0_i32_8 : i32
    %10 = arith.extui %9 : i1 to i32
    %c0_i32_9 = arith.constant 0 : i32
    %11 = arith.cmpi ne, %10, %c0_i32_9 : i32
    scf.if %11 {
      %c0_10 = arith.constant 0 : index
      %c0_11 = arith.constant 0 : index
      %12 = vector.load %arg8[%c0_10, %c0_11] : memref<512x128xf32, #tpu.memory_space<vmem>>, vector<512x128xf32>
      %c0_12 = arith.constant 0 : index
      %c0_13 = arith.constant 0 : index
      %13 = vector.load %arg5[%c0_12, %c0_13] : memref<1x128xf32, #tpu.memory_space<vmem>>, vector<1x128xf32>
      %14 = vector.broadcast %13 : vector<1x128xf32> to vector<512x128xf32>
      %15 = arith.mulf %12, %14 : vector<512x128xf32>
      %c0_14 = arith.constant 0 : index
      %c0_15 = arith.constant 0 : index
      %16 = vector.load %arg6[%c0_14, %c0_15] : memref<1x128xf32, #tpu.memory_space<vmem>>, vector<1x128xf32>
      %17 = vector.broadcast %16 : vector<1x128xf32> to vector<512x128xf32>
      %18 = arith.addf %15, %17 : vector<512x128xf32>
      %cst_16 = arith.constant 0.000000e+00 : f32
      %19 = vector.broadcast %cst_16 : f32 to vector<512x128xf32>
      %20 = arith.maximumf %18, %19 : vector<512x128xf32>
      %21 = arith.truncf %20 : vector<512x128xf32> to vector<512x128xbf16>
      %c0_17 = arith.constant 0 : index
      %c0_18 = arith.constant 0 : index
      %22 = vector.load %arg7[%c0_17, %c0_18] : memref<512x128xbf16, #tpu.memory_space<vmem>>, vector<512x128xbf16>
      tpu.vector_store %arg7[%c0_17, %c0_18], %21 {strides = array<i32>} : memref<512x128xbf16, #tpu.memory_space<vmem>>, vector<512x128xbf16>,
    } else {
    }
    return
  }
  func.func @transform_0(%arg0: i32, %arg1: i32, %arg2: i32) -> (i32, i32) {
    %c0_i32 = arith.constant 0 : i32
    return %arg0, %arg2 : i32, i32
  }
  func.func @transform_1(%arg0: i32, %arg1: i32, %arg2: i32) -> (i32, i32) {
    %c0_i32 = arith.constant 0 : i32
    return %arg2, %arg1 : i32, i32
  }
  func.func @transform_2(%arg0: i32, %arg1: i32, %arg2: i32) -> (i32, i32) {
    %c0_i32 = arith.constant 0 : i32
    %c0_i32_0 = arith.constant 0 : i32
    return %c0_i32, %arg1 : i32, i32
  }
  func.func @transform_3(%arg0: i32, %arg1: i32, %arg2: i32) -> (i32, i32) {
    %c0_i32 = arith.constant 0 : i32
    %c0_i32_0 = arith.constant 0 : i32
    return %c0_i32, %arg1 : i32, i32
  }
  func.func @transform_4(%arg0: i32, %arg1: i32, %arg2: i32) -> (i32, i32) {
    %c0_i32 = arith.constant 0 : i32
    return %arg0, %arg1 : i32, i32
  }
}

</mosaic_0001>

<bundles_post_ra>
// kernel: tpu_custom_call.1
= control target key start
LH: loop header
LB: loop body
LE: loop exit
PB: predicated region body
PF: predicated region fallthrough
CT: control target
= control target key end

     0   :  { %s2757_s0 = inlined_call_operand.hbm [shape: bf16[50688,128], index: 0, kind: input, shape index: {}]   ;;  %s2758_s1 = inlined_call_operand.hbm [shape: bf16[128,128], index: 1, kind: input, shape index: {}]   ;;  %s2759_s2 = inlined_call_operand.hbm [shape: f32[1,128], index: 2, kind: input, shape index: {}]   ;;  %s2760_s3 = inlined_call_operand.hbm [shape: f32[1,128], index: 3, kind: input, shape index: {}]   ;;  %s2761_s4 = inlined_call_operand.hbm [shape: bf16[50688,128], index: 4, kind: output, shape index: {}]  }
   0x1   :  { %2764 = sst [smem:[#allocation16_spill]] %s2758_s1 }
   0x2   :  { %2765 = sst [smem:[#allocation17_spill]] %s2759_s2 }
   0x3   :  { %9 = vsyncpa [#allocation4], 0 }
   0x4   :  { %11 = vsyncpa [#allocation4 + $0x1], 0 }
   0x5   :  { %12 = vsyncpa [#allocation7], 0 }
   0x6   :  { %13 = vsyncpa [#allocation10], 0 }
   0x7   :  { %14 = vsyncpa [#allocation5], 0 }
   0x8   :  { %16 = vsyncpa [#allocation5 + $0x1], 0  ;;  %s2379_s15 = smov 0   ;;  %s2381_s16 = smov 0  }
   0x9   :  { %s2383_s17 = smov 0   ;;  %s2385_s18 = smov 0  }
   0xa   :  { %s2387_s19 = smov 0   ;;  %s2389_s20 = smov 0  }
   0xb LB: > { %s1598_s21 = sadd.s32 4294967295, %s2345_s20   ;;  %s1599_s22 = sadd.s32 4294967294, %s2345_s20   ;;  %s2345_s20 = sphi %s2389_s20, %s22_s20   ;;  %s2341_s19 = sphi %s2387_s19, %s2782_s19   ;;  %s2337_s18 = sphi %s2385_s18, %s2781_s18   ;;  %s2333_s17 = sphi %s2383_s17, %s2780_s17   ;;  %s2329_s16 = sphi %s2381_s16, %s2779_s16   ;;  %s2325_s15 = sphi %s2379_s15, %s2778_s15  }
   0xc   : > { %p63_p0 = scmp.ne.s32.totalorder %s2329_s16, %s2325_s15  ;;  %p2413_p1 = scmp.eq.s32.totalorder %s1598_s21, 0 }
   0xd   : > { %p2417_p2 = scmp.eq.s32.totalorder %s1598_s21, 98  ;;  %p175_p3 = scmp.eq.s32.totalorder %s1599_s22, 98 }
   0xe   : > { %p2423_p4 = por %p2413_p1, %p63_p0  ;;  %p1600_p5 = scmp.ge.s32.totalorder %s2345_s20, 1 }
   0xf   : > { %p2428_p6 = por %p175_p3, %p63_p0  ;;  %p182_p7 = scmp.lt.s32.totalorder %s2345_s20, 100 }
  0x10   : > { %s2770_s1 = sld [smem:[#allocation16_spill]]  ;;  %s2347_s5 = smov [#allocation6]  }
  0x11   : > { %p2436_p8 = pnand %p1600_p5, %p182_p7  ;;  %s199_s6 = sshll.u32 %s2347_s5, 4  ;;  %s200_s6 = int_to_ptr.vmem [resolvable:$true] %s199_s6 }
  0x12   : > { %s2773_s2 = sld [smem:[#allocation17_spill]]  ;;  %s2762_s11 = smov 64  }
  0x13   : > { %p2052_p9 = pneg %p2436_p8  ;;  %s2763_s12 = smov 4  }
  0x14   : > { %s2350_s13 = smov [#allocation8]   ;;  %s226_s27 = sshll.u32 %s2760_s3, 4  ;;  %s227_s27 = int_to_ptr.hbm [resolvable:$true] %s226_s27 }
  0x15   : > { %p2444_p10 = pnand %p2052_p9, %p2413_p1  ;;  %s215_s14 = sshll.u32 %s2350_s13, 4  ;;  %s216_s14 = int_to_ptr.vmem [resolvable:$true] %s215_s14 }
  0x16   : > { %s197_s29 = sshll.u32 %s2770_s1, 4  ;;  %s2351_s28 = smov [#allocation9]   ;;  %s198_s29 = int_to_ptr.hbm [resolvable:$true] %s197_s29 }
  0x17   : > { %2055 = dma.hbm_to_vmem [thread:$0]  (!%p2444_p10), %s198_s29, 1024, %s200_s6, [#allocation7], %s2762_s11, %s2762_s11, %s2763_s12  }
  0x18   : > { %s213_s10 = sshll.u32 %s2773_s2, 4  ;;  %s228_s5 = sshll.u32 %s2351_s28, 4  ;;  %s214_s10 = int_to_ptr.hbm [resolvable:$true] %s213_s10  ;;  %s229_s5 = int_to_ptr.vmem [resolvable:$true] %s228_s5 }
  0x19   : > { %2058 = dma.hbm_to_vmem [thread:$0]  (!%p2444_p10), %s214_s10, 16, %s216_s14, [#allocation7]  }
  0x1a   : > { %2061 = dma.hbm_to_vmem [thread:$0]  (!%p2444_p10), %s227_s27, 16, %s229_s5, [#allocation10]  }
  0x1b   : > { %s41_s29 = sadd.s32 1, %s2341_s19  ;;  %s50_s6 = sadd.s32 1, %s2333_s17 }
  0x1c   : > { %p43_p11 = scmp.ge.s32.totalorder %s41_s29, 99  ;;  %p57_p12 = scmp.ne.s32.totalorder %s2333_s17, %s2329_s16 }
  0x1d   : > { %p58_p13 = scmp.eq.s32.totalorder %s2345_s20, 0  ;;  %p2073_p5 = scmp.lt.s32.totalorder %s2345_s20, 99 }
  0x1e   : > { %s2784_s29 = smov (%p43_p11, %s41_s29), 0  ;;  %p2476_p3 = por %p2417_p2, %p57_p12 }
  0x1f   : > { %p2470_p0 = por %p58_p13, %p57_p12  ;;  %s45_s7 = ssub.s32 %s2341_s19, %s2784_s29 }
  0x20   : > { %p48_p7 = scmp.eq.s32.totalorder %s45_s7, 0  ;;  %s239_s10 = sand.u32 1, %s2333_s17  }
  0x21   : > { %s1605_s13 = sshll.u32 %s239_s10, 8  ;;  %s1779_s21 = sshll.u32 %s2341_s19, 8 }
  0x22   : > { %s2485_s14 = scalar_select %p48_p7, %s2333_s17, %s50_s6  }
  0x23   : > { %s249_s28 = scalar_lea.hbm %s2757_s0, %s1779_s21  ;;  %s243_s5 = scalar_lea.vmem [#allocation3], %s1605_s13 }
  0x24   : > { %s252_s11 = sshll.u32 %s243_s5, 4  ;;  %s250_s24 = sshll.u32 %s249_s28, 4  ;;  %s253_s11 = int_to_ptr.vmem [resolvable:$true] %s252_s11  ;;  %s251_s24 = int_to_ptr.hbm [resolvable:$true] %s250_s24 }
  0x25   : > { %p2063_p2 = pnand %p2073_p5, %p2470_p0  ;;  %s240_s12 = scalar_lea.sflag [#allocation4], %s239_s10 }
  0x26   : > { %s2776_s1 = smov 4   ;;  %s2777_s2 = smov 64  }
  0x27   : > { %2065 = dma.hbm_to_vmem [thread:$0]  (!%p2063_p2), %s251_s24, 4096, %s253_s11, %s240_s12, %s2777_s2, %s2777_s2, %s2776_s1  }
  0x28   : > { %264 = sbr.rel (%p2436_p8) target bundleno = 348 (0x15c), region = 36  ;;  %s2499_s6 = sand.u32 (!%p2436_p8), 1, %s2329_s16  }
  0x29   : > { %s1609_s7 = sshll.u32 (!%p2436_p8), %s2499_s6, 8  ;;  %s267_s13 = scalar_lea.sflag (!%p2436_p8), [#allocation4], %s2499_s6 }
  0x2a   : > { %s2505_s8 = scalar_lea.vmem (!%p2436_p8), [#allocation3], %s1609_s7 }
  0x2d   : > { %2308 = dma.done.wait (%p2423_p4), %s267_s13, 4096  }
  0x2e   : > { %2310 = vsyncadd (%p2423_p4), %s267_s13, 4294963200 }
  0x2f   : > { %2312 = dma.done.wait (%p2413_p1), [#allocation7], 1040  }
  0x30   : > { %2314 = vsyncadd (%p2413_p1), [#allocation7], 4294966256 }
  0x31   : > { %2316 = dma.done.wait (%p2413_p1), [#allocation10], 16  }
  0x32   : > { %2318 = vsyncadd (%p2413_p1), [#allocation10], 4294967280  ;;  %v1819_v0 = vld [vmem:[#allocation6 + $0x38] sm:$0xff]  ;;  %v1818_v1 = vld [vmem:[#allocation6 + $0x30] sm:$0xff]  ;;  %s2571_s1 = scalar_lea.vmem [#allocation11], %s1609_s7  ;;  %s1820_s2 = sshll.u32 %s2337_s18, 8 }
  0x33   : > { %766 = vmatpush.bf16.msra.mxu0 %v1819_v0  ;;  %2012 = vmatpush.bf16.msra.mxu1 %v1819_v0  ;;  %v1817_v2 = vld [vmem:[#allocation6 + $0x28] sm:$0xff]  ;;  %v1816_v3 = vld [vmem:[#allocation6 + $0x20] sm:$0xff]  ;;  %v1815_v4 = vld [vmem:[#allocation6 + $0x18] sm:$0xff]  ;;  %s1471_s30 = scalar_lea.hbm %s2761_s4, %s1820_s2  ;;  %s1472_s18 = sshll.u32 %s2571_s1, 4  ;;  %s1473_s18 = int_to_ptr.vmem [resolvable:$true] %s1472_s18 }
  0x34   : > { %2013 = vmatpush.bf16.msra.mxu2 %v1819_v0  ;;  %2014 = vmatpush.bf16.msra.mxu3 %v1819_v0  ;;  %v1814_v5 = vld [vmem:[#allocation6 + $0x10] sm:$0xff]  ;;  %v1813_v6 = vld [vmem:[#allocation6 + $0x8] sm:$0xff]  ;;  %v1812_v7 = vld [vmem:[#allocation6] sm:$0xff]  ;;  %s1474_s11 = sshll.u32 %s1471_s30, 4  ;;  %s1459_s12 = scalar_lea.sflag [#allocation5], %s2499_s6  ;;  %s1475_s11 = int_to_ptr.hbm [resolvable:$true] %s1474_s11 }
  0x35   : > { %v1780_v8 = vld [vmem:[%s2505_s8] sm:$0xff]  ;;  %v1781_v12 = vld [vmem:[%s2505_s8 + $0x8] sm:$0xff]  ;;  %v1782_v16 = vld [vmem:[%s2505_s8 + $0x10] sm:$0xff]  ;;  %s2269_s10 = sshra.s32 %s1475_s11, 4  ;;  %s2275_s28 = scalar_lea.hbm %s2761_s4, 25344  ;;  %s2270_s10 = int_to_ptr.hbm [resolvable:$true] %s2269_s10 }
  0x36   : > { %v1788_v9 = vld [vmem:[%s2505_s8 + $0x40] sm:$0xff]  ;;  %v1789_v13 = vld [vmem:[%s2505_s8 + $0x48] sm:$0xff]  ;;  %v1790_v17 = vld [vmem:[%s2505_s8 + $0x50] sm:$0xff]  ;;  %s2271_s21 = scalar_lea.hbm %s2270_s10, 256  ;;  %p2276_p9 = scmp.lt.s32.totalorder %s2270_s10, %s2761_s4 }
  0x37   : > { %767 = vmatpush.bf16.msra.mxu0 %v1818_v1  ;;  %2015 = vmatpush.bf16.msra.mxu1 %v1818_v1  ;;  %v1796_v10 = vld [vmem:[%s2505_s8 + $0x80] sm:$0xff]  ;;  %v1797_v14 = vld [vmem:[%s2505_s8 + $0x88] sm:$0xff]  ;;  %v1798_v18 = vld [vmem:[%s2505_s8 + $0x90] sm:$0xff]  ;;  %p2272_p1 = scmp.ne.s32.totalorder %s2270_s10, %s2271_s21  ;;  %p2277_p10 = scmp.lt.s32.totalorder %s2275_s28, %s2271_s21 }
  0x38   : > { %2016 = vmatpush.bf16.msra.mxu2 %v1818_v1  ;;  %2017 = vmatpush.bf16.msra.mxu3 %v1818_v1  ;;  %v1804_v11 = vld [vmem:[%s2505_s8 + $0xc0] sm:$0xff]  ;;  %v1805_v15 = vld [vmem:[%s2505_s8 + $0xc8] sm:$0xff]  ;;  %v1806_v19 = vld [vmem:[%s2505_s8 + $0xd0] sm:$0xff] }
  0x39   : > { %v1783_v20 = vld [vmem:[%s2505_s8 + $0x18] sm:$0xff]  ;;  %v1784_v24 = vld [vmem:[%s2505_s8 + $0x20] sm:$0xff]  ;;  %v1785_v28 = vld [vmem:[%s2505_s8 + $0x28] sm:$0xff]  ;;  %p2273_p4 = pnand %p2272_p1, %p2476_p3  ;;  %p2278_p11 = por %p2277_p10, %p2276_p9 }
  0x3a   : > { %v1791_v21 = vld [vmem:[%s2505_s8 + $0x58] sm:$0xff]  ;;  %v1792_v25 = vld [vmem:[%s2505_s8 + $0x60] sm:$0xff]  ;;  %v1793_v29 = vld [vmem:[%s2505_s8 + $0x68] sm:$0xff] }
  0x3b   : > { %768 = vmatpush.bf16.msra.mxu0 %v1817_v2  ;;  %2018 = vmatpush.bf16.msra.mxu1 %v1817_v2  ;;  %v1799_v22 = vld [vmem:[%s2505_s8 + $0x98] sm:$0xff]  ;;  %v1800_v26 = vld [vmem:[%s2505_s8 + $0xa0] sm:$0xff]  ;;  %v1801_v30 = vld [vmem:[%s2505_s8 + $0xa8] sm:$0xff]  ;;  %p2274_p8 = pneg %p2273_p4 }
  0x3c   : > { %2019 = vmatpush.bf16.msra.mxu2 %v1817_v2  ;;  %2020 = vmatpush.bf16.msra.mxu3 %v1817_v2  ;;  %v1807_v23 = vld [vmem:[%s2505_s8 + $0xd8] sm:$0xff]  ;;  %v1808_v27 = vld [vmem:[%s2505_s8 + $0xe0] sm:$0xff]  ;;  %v1809_v31 = vld [vmem:[%s2505_s8 + $0xe8] sm:$0xff] }
  0x3d   : > { %v1786_v32 = vld [vmem:[%s2505_s8 + $0x30] sm:$0xff]  ;;  %v1787_v36 = vld [vmem:[%s2505_s8 + $0x38] sm:$0xff]  ;;  %v2551_v42 = vld [vmem:[#allocation8] ss:$0 sm:$0xff]  ;;  %p2279_p12 = pnand %p2278_p11, %p2274_p8 }
  0x3e   : > { %v1794_v33 = vld [vmem:[%s2505_s8 + $0x70] sm:$0xff]  ;;  %v1795_v37 = vld [vmem:[%s2505_s8 + $0x78] sm:$0xff]  ;;  %v2554_v44 = vld [vmem:[#allocation9] ss:$0 sm:$0xff] }
  0x3f   : > { %769 = vmatpush.bf16.msra.mxu0 %v1816_v3  ;;  %2021 = vmatpush.bf16.msra.mxu1 %v1816_v3  ;;  %v1802_v34 = vld [vmem:[%s2505_s8 + $0xb0] sm:$0xff]  ;;  %v1803_v38 = vld [vmem:[%s2505_s8 + $0xb8] sm:$0xff] }
  0x40   : > { %2022 = vmatpush.bf16.msra.mxu2 %v1816_v3  ;;  %2023 = vmatpush.bf16.msra.mxu3 %v1816_v3  ;;  %v1810_v35 = vld [vmem:[%s2505_s8 + $0xf0] sm:$0xff]  ;;  %v1811_v39 = vld [vmem:[%s2505_s8 + $0xf8] sm:$0xff] }
  0x43   : > { %770 = vmatpush.bf16.msra.mxu0 %v1815_v4  ;;  %2024 = vmatpush.bf16.msra.mxu1 %v1815_v4 }
  0x44   : > { %2025 = vmatpush.bf16.msra.mxu2 %v1815_v4  ;;  %2026 = vmatpush.bf16.msra.mxu3 %v1815_v4 }
  0x47   : > { %771 = vmatpush.bf16.msra.mxu0 %v1814_v5  ;;  %2027 = vmatpush.bf16.msra.mxu1 %v1814_v5 }
  0x48   : > { %2028 = vmatpush.bf16.msra.mxu2 %v1814_v5  ;;  %2029 = vmatpush.bf16.msra.mxu3 %v1814_v5 }
  0x4b   : > { %772 = vmatpush.bf16.msra.mxu0 %v1813_v6  ;;  %2030 = vmatpush.bf16.msra.mxu1 %v1813_v6 }
  0x4c   : > { %2031 = vmatpush.bf16.msra.mxu2 %v1813_v6  ;;  %2032 = vmatpush.bf16.msra.mxu3 %v1813_v6 }
  0x4f   : > { %773 = vmatpush.bf16.msra.mxu0 %v1812_v7  ;;  %2033 = vmatpush.bf16.msra.mxu1 %v1812_v7 }
  0x50   : > { %2034 = vmatpush.bf16.msra.mxu2 %v1812_v7  ;;  %2035 = vmatpush.bf16.msra.mxu3 %v1812_v7 }
  0x52   : > { %774 = vmatmul.bf16.vlgmr.msra.gmra.mxu0 %v1780_v8  ;;  %814 = vmatmul.bf16.vlgmr.msra.gmra.mxu1 %v1788_v9 }
  0x53   : > { %854 = vmatmul.bf16.vlgmr.msra.gmra.mxu2 %v1796_v10  ;;  %894 = vmatmul.bf16.vlgmr.msra.gmra.mxu3 %v1804_v11 }
  0x62   : > { %779 = vmatmul.bf16.gmra.mxu0 %v1781_v12  ;;  %819 = vmatmul.bf16.gmra.mxu1 %v1789_v13 }
  0x63   : > { %859 = vmatmul.bf16.gmra.mxu2 %v1797_v14  ;;  %899 = vmatmul.bf16.gmra.mxu3 %v1805_v15 }
  0x72   : > { %784 = vmatmul.bf16.gmra.mxu0 %v1782_v16  ;;  %824 = vmatmul.bf16.gmra.mxu1 %v1790_v17 }
  0x73   : > { %864 = vmatmul.bf16.gmra.mxu2 %v1798_v18  ;;  %904 = vmatmul.bf16.gmra.mxu3 %v1806_v19 }
  0x82   : > { %789 = vmatmul.bf16.gmra.mxu0 %v1783_v20  ;;  %829 = vmatmul.bf16.gmra.mxu1 %v1791_v21 }
  0x83   : > { %869 = vmatmul.bf16.gmra.mxu2 %v1799_v22  ;;  %909 = vmatmul.bf16.gmra.mxu3 %v1807_v23 }
  0x92   : > { %794 = vmatmul.bf16.gmra.mxu0 %v1784_v24  ;;  %834 = vmatmul.bf16.gmra.mxu1 %v1792_v25 }
  0x93   : > { %874 = vmatmul.bf16.gmra.mxu2 %v1800_v26  ;;  %914 = vmatmul.bf16.gmra.mxu3 %v1808_v27 }
  0xa2   : > { %799 = vmatmul.bf16.gmra.mxu0 %v1785_v28  ;;  %839 = vmatmul.bf16.gmra.mxu1 %v1793_v29 }
  0xa3   : > { %879 = vmatmul.bf16.gmra.mxu2 %v1801_v30  ;;  %919 = vmatmul.bf16.gmra.mxu3 %v1809_v31 }
  0xb2   : > { %804 = vmatmul.bf16.gmra.mxu0 %v1786_v32  ;;  %844 = vmatmul.bf16.gmra.mxu1 %v1794_v33 }
  0xb3   : > { %884 = vmatmul.bf16.gmra.mxu2 %v1802_v34  ;;  %924 = vmatmul.bf16.gmra.mxu3 %v1810_v35 }
  0xc2   : > { %809 = vmatmul.bf16.gmra.mxu0 %v1787_v36  ;;  %849 = vmatmul.bf16.gmra.mxu1 %v1795_v37 }
  0xc3   : > { %889 = vmatmul.bf16.gmra.mxu2 %v1803_v38  ;;  %929 = vmatmul.bf16.gmra.mxu3 %v1811_v39 }
  0xcf   : > { %v775_v40 = vpop.f32.mrf.mxu0  ;;  %v815_v41 = vpop.f32.mrf.mxu1 }
  0xd0   : > { %v1134_v43 = vmul.f32 %v2551_v42, %v775_v40  ;;  %v1150_v45 = vmul.f32 %v2551_v42, %v815_v41 }
  0xd2   : > { %v1202_v50 = vadd.f32 %v2554_v44, %v1134_v43  ;;  %v1218_v51 = vadd.f32 %v2554_v44, %v1150_v45 }
  0xd4   : > { %v1266_v58 = vmax.f32 %v1202_v50, 0.0  ;;  %v1282_v59 = vmax.f32 %v1218_v51, 0.0 }
  0xd6   : > { %v855_v46 = vpop.f32.mrf.mxu2  ;;  %v895_v47 = vpop.f32.mrf.mxu3 }
  0xd7   : > { %v777_v48 = vpop.f32.mrf.mxu0  ;;  %v817_v49 = vpop.f32.mrf.mxu1  ;;  %v1166_v56 = vmul.f32 %v2551_v42, %v855_v46  ;;  %v1182_v57 = vmul.f32 %v2551_v42, %v895_v47 }
  0xd8   : > { %v1135_v52 = vmul.f32 %v2551_v42, %v777_v48  ;;  %v1151_v53 = vmul.f32 %v2551_v42, %v817_v49 }
  0xd9   : > { %v1234_v2 = vadd.f32 %v2554_v44, %v1166_v56  ;;  %v1250_v3 = vadd.f32 %v2554_v44, %v1182_v57 }
  0xda   : > { %v1203_v54 = vadd.f32 %v2554_v44, %v1135_v52  ;;  %v1219_v55 = vadd.f32 %v2554_v44, %v1151_v53 }
  0xdb   : > { %v1298_v10 = vmax.f32 %v1234_v2, 0.0  ;;  %v1314_v11 = vmax.f32 %v1250_v3, 0.0 }
  0xdc   : > { %v1267_v60 = vmax.f32 %v1203_v54, 0.0  ;;  %v1283_v61 = vmax.f32 %v1219_v55, 0.0 }
  0xde   : > { %v1824_v62 = vpack.c.bf16 %v1267_v60, %v1266_v58  ;;  %v1864_v63 = vpack.c.bf16 %v1283_v61, %v1282_v59  ;;  %v857_v0 = vpop.f32.mrf.mxu2  ;;  %v897_v1 = vpop.f32.mrf.mxu3 }
  0xdf   : > { %v1167_v4 = vmul.f32 %v2551_v42, %v857_v0  ;;  %v1183_v5 = vmul.f32 %v2551_v42, %v897_v1  ;;  %v780_v6 = vpop.f32.mrf.mxu0  ;;  %v820_v7 = vpop.f32.mrf.mxu1 }
  0xe0   : > { %1825 = vst [vmem:[%s2571_s1] sm:$0xff] %v1824_v62   ;;  %v1136_v14 = vmul.f32 %v2551_v42, %v780_v6  ;;  %v1152_v15 = vmul.f32 %v2551_v42, %v820_v7 }
  0xe1   : > { %1988 = vst [vmem:[%s2571_s1 + $0x40] sm:$0xff] %v1864_v63   ;;  %v1235_v8 = vadd.f32 %v2554_v44, %v1167_v4  ;;  %v1251_v9 = vadd.f32 %v2554_v44, %v1183_v5 }
  0xe2   : > { %v1204_v22 = vadd.f32 %v2554_v44, %v1136_v14  ;;  %v1220_v23 = vadd.f32 %v2554_v44, %v1152_v15 }
  0xe3   : > { %v1299_v12 = vmax.f32 %v1235_v8, 0.0  ;;  %v1315_v13 = vmax.f32 %v1251_v9, 0.0 }
  0xe4   : > { %v1268_v30 = vmax.f32 %v1204_v22, 0.0  ;;  %v1284_v31 = vmax.f32 %v1220_v23, 0.0 }
  0xe5   : > { %v1904_v16 = vpack.c.bf16 %v1299_v12, %v1298_v10  ;;  %v1944_v17 = vpack.c.bf16 %v1315_v13, %v1314_v11 }
  0xe6   : > { %v860_v18 = vpop.f32.mrf.mxu2  ;;  %v900_v19 = vpop.f32.mrf.mxu3 }
  0xe7   : > { %1996 = vst [vmem:[%s2571_s1 + $0x80] sm:$0xff] %v1904_v16   ;;  %v782_v20 = vpop.f32.mrf.mxu0  ;;  %v822_v21 = vpop.f32.mrf.mxu1  ;;  %v1168_v28 = vmul.f32 %v2551_v42, %v860_v18  ;;  %v1184_v29 = vmul.f32 %v2551_v42, %v900_v19 }
  0xe8   : > { %2004 = vst [vmem:[%s2571_s1 + $0xc0] sm:$0xff] %v1944_v17   ;;  %v1137_v24 = vmul.f32 %v2551_v42, %v782_v20  ;;  %v1153_v25 = vmul.f32 %v2551_v42, %v822_v21 }
  0xe9   : > { %v1236_v38 = vadd.f32 %v2554_v44, %v1168_v28  ;;  %v1252_v39 = vadd.f32 %v2554_v44, %v1184_v29 }
  0xea   : > { %v1205_v26 = vadd.f32 %v2554_v44, %v1137_v24  ;;  %v1221_v27 = vadd.f32 %v2554_v44, %v1153_v25 }
  0xeb   : > { %v1300_v48 = vmax.f32 %v1236_v38, 0.0  ;;  %v1316_v49 = vmax.f32 %v1252_v39, 0.0 }
  0xec   : > { %v1269_v32 = vmax.f32 %v1205_v26, 0.0  ;;  %v1285_v33 = vmax.f32 %v1221_v27, 0.0 }
  0xee   : > { %v1829_v34 = vpack.c.bf16 %v1269_v32, %v1268_v30  ;;  %v1869_v35 = vpack.c.bf16 %v1285_v33, %v1284_v31  ;;  %v862_v36 = vpop.f32.mrf.mxu2  ;;  %v902_v37 = vpop.f32.mrf.mxu3 }
  0xef   : > { %v1169_v40 = vmul.f32 %v2551_v42, %v862_v36  ;;  %v1185_v41 = vmul.f32 %v2551_v42, %v902_v37  ;;  %v785_v43 = vpop.f32.mrf.mxu0  ;;  %v825_v45 = vpop.f32.mrf.mxu1 }
  0xf0   : > { %1981 = vst [vmem:[%s2571_s1 + $0x8] sm:$0xff] %v1829_v34   ;;  %v1138_v52 = vmul.f32 %v2551_v42, %v785_v43  ;;  %v1154_v53 = vmul.f32 %v2551_v42, %v825_v45 }
  0xf1   : > { %1989 = vst [vmem:[%s2571_s1 + $0x48] sm:$0xff] %v1869_v35   ;;  %v1237_v46 = vadd.f32 %v2554_v44, %v1169_v40  ;;  %v1253_v47 = vadd.f32 %v2554_v44, %v1185_v41 }
  0xf2   : > { %v1206_v60 = vadd.f32 %v2554_v44, %v1138_v52  ;;  %v1222_v61 = vadd.f32 %v2554_v44, %v1154_v53 }
  0xf3   : > { %v1301_v50 = vmax.f32 %v1237_v46, 0.0  ;;  %v1317_v51 = vmax.f32 %v1253_v47, 0.0 }
  0xf4   : > { %v1270_v4 = vmax.f32 %v1206_v60, 0.0  ;;  %v1286_v5 = vmax.f32 %v1222_v61, 0.0 }
  0xf5   : > { %v1909_v54 = vpack.c.bf16 %v1301_v50, %v1300_v48  ;;  %v1949_v55 = vpack.c.bf16 %v1317_v51, %v1316_v49 }
  0xf6   : > { %v865_v56 = vpop.f32.mrf.mxu2  ;;  %v905_v57 = vpop.f32.mrf.mxu3 }
  0xf7   : > { %1997 = vst [vmem:[%s2571_s1 + $0x88] sm:$0xff] %v1909_v54   ;;  %v787_v58 = vpop.f32.mrf.mxu0  ;;  %v827_v59 = vpop.f32.mrf.mxu1  ;;  %v1170_v2 = vmul.f32 %v2551_v42, %v865_v56  ;;  %v1186_v3 = vmul.f32 %v2551_v42, %v905_v57 }
  0xf8   : > { %2005 = vst [vmem:[%s2571_s1 + $0xc8] sm:$0xff] %v1949_v55   ;;  %v1139_v62 = vmul.f32 %v2551_v42, %v787_v58  ;;  %v1155_v63 = vmul.f32 %v2551_v42, %v827_v59 }
  0xf9   : > { %v1238_v12 = vadd.f32 %v2554_v44, %v1170_v2  ;;  %v1254_v13 = vadd.f32 %v2554_v44, %v1186_v3 }
  0xfa   : > { %v1207_v0 = vadd.f32 %v2554_v44, %v1139_v62  ;;  %v1223_v1 = vadd.f32 %v2554_v44, %v1155_v63 }
  0xfb   : > { %v1302_v20 = vmax.f32 %v1238_v12, 0.0  ;;  %v1318_v21 = vmax.f32 %v1254_v13, 0.0 }
  0xfc   : > { %v1271_v6 = vmax.f32 %v1207_v0, 0.0  ;;  %v1287_v7 = vmax.f32 %v1223_v1, 0.0 }
  0xfe   : > { %v1834_v8 = vpack.c.bf16 %v1271_v6, %v1270_v4  ;;  %v1874_v9 = vpack.c.bf16 %v1287_v7, %v1286_v5  ;;  %v867_v10 = vpop.f32.mrf.mxu2  ;;  %v907_v11 = vpop.f32.mrf.mxu3 }
  0xff   : > { %v1171_v14 = vmul.f32 %v2551_v42, %v867_v10  ;;  %v1187_v15 = vmul.f32 %v2551_v42, %v907_v11  ;;  %v790_v16 = vpop.f32.mrf.mxu0  ;;  %v830_v17 = vpop.f32.mrf.mxu1 }
 0x100   : > { %1982 = vst [vmem:[%s2571_s1 + $0x10] sm:$0xff] %v1834_v8   ;;  %v1140_v24 = vmul.f32 %v2551_v42, %v790_v16  ;;  %v1156_v25 = vmul.f32 %v2551_v42, %v830_v17 }
 0x101   : > { %1990 = vst [vmem:[%s2571_s1 + $0x50] sm:$0xff] %v1874_v9   ;;  %v1239_v18 = vadd.f32 %v2554_v44, %v1171_v14  ;;  %v1255_v19 = vadd.f32 %v2554_v44, %v1187_v15 }
 0x102   : > { %v1208_v32 = vadd.f32 %v2554_v44, %v1140_v24  ;;  %v1224_v33 = vadd.f32 %v2554_v44, %v1156_v25 }
 0x103   : > { %v1303_v22 = vmax.f32 %v1239_v18, 0.0  ;;  %v1319_v23 = vmax.f32 %v1255_v19, 0.0 }
 0x104   : > { %v1272_v40 = vmax.f32 %v1208_v32, 0.0  ;;  %v1288_v41 = vmax.f32 %v1224_v33, 0.0 }
 0x105   : > { %v1914_v26 = vpack.c.bf16 %v1303_v22, %v1302_v20  ;;  %v1954_v27 = vpack.c.bf16 %v1319_v23, %v1318_v21 }
 0x106   : > { %v870_v28 = vpop.f32.mrf.mxu2  ;;  %v910_v29 = vpop.f32.mrf.mxu3 }
 0x107   : > { %1998 = vst [vmem:[%s2571_s1 + $0x90] sm:$0xff] %v1914_v26   ;;  %v792_v30 = vpop.f32.mrf.mxu0  ;;  %v832_v31 = vpop.f32.mrf.mxu1  ;;  %v1172_v38 = vmul.f32 %v2551_v42, %v870_v28  ;;  %v1188_v39 = vmul.f32 %v2551_v42, %v910_v29 }
 0x108   : > { %2006 = vst [vmem:[%s2571_s1 + $0xd0] sm:$0xff] %v1954_v27   ;;  %v1141_v34 = vmul.f32 %v2551_v42, %v792_v30  ;;  %v1157_v35 = vmul.f32 %v2551_v42, %v832_v31 }
 0x109   : > { %v1240_v50 = vadd.f32 %v2554_v44, %v1172_v38  ;;  %v1256_v51 = vadd.f32 %v2554_v44, %v1188_v39 }
 0x10a   : > { %v1209_v36 = vadd.f32 %v2554_v44, %v1141_v34  ;;  %v1225_v37 = vadd.f32 %v2554_v44, %v1157_v35 }
 0x10b   : > { %v1304_v58 = vmax.f32 %v1240_v50, 0.0  ;;  %v1320_v59 = vmax.f32 %v1256_v51, 0.0 }
 0x10c   : > { %v1273_v43 = vmax.f32 %v1209_v36, 0.0  ;;  %v1289_v45 = vmax.f32 %v1225_v37, 0.0 }
 0x10e   : > { %v1839_v46 = vpack.c.bf16 %v1273_v43, %v1272_v40  ;;  %v1879_v47 = vpack.c.bf16 %v1289_v45, %v1288_v41  ;;  %v872_v48 = vpop.f32.mrf.mxu2  ;;  %v912_v49 = vpop.f32.mrf.mxu3 }
 0x10f   : > { %v1173_v52 = vmul.f32 %v2551_v42, %v872_v48  ;;  %v1189_v53 = vmul.f32 %v2551_v42, %v912_v49  ;;  %v795_v54 = vpop.f32.mrf.mxu0  ;;  %v835_v55 = vpop.f32.mrf.mxu1 }
 0x110   : > { %1983 = vst [vmem:[%s2571_s1 + $0x18] sm:$0xff] %v1839_v46   ;;  %v1142_v62 = vmul.f32 %v2551_v42, %v795_v54  ;;  %v1158_v63 = vmul.f32 %v2551_v42, %v835_v55 }
 0x111   : > { %1991 = vst [vmem:[%s2571_s1 + $0x58] sm:$0xff] %v1879_v47   ;;  %v1241_v56 = vadd.f32 %v2554_v44, %v1173_v52  ;;  %v1257_v57 = vadd.f32 %v2554_v44, %v1189_v53 }
 0x112   : > { %v1210_v6 = vadd.f32 %v2554_v44, %v1142_v62  ;;  %v1226_v7 = vadd.f32 %v2554_v44, %v1158_v63 }
 0x113   : > { %v1305_v60 = vmax.f32 %v1241_v56, 0.0  ;;  %v1321_v61 = vmax.f32 %v1257_v57, 0.0 }
 0x114   : > { %v1274_v14 = vmax.f32 %v1210_v6, 0.0  ;;  %v1290_v15 = vmax.f32 %v1226_v7, 0.0 }
 0x115   : > { %v1919_v0 = vpack.c.bf16 %v1305_v60, %v1304_v58  ;;  %v1959_v1 = vpack.c.bf16 %v1321_v61, %v1320_v59 }
 0x116   : > { %v875_v2 = vpop.f32.mrf.mxu2  ;;  %v915_v3 = vpop.f32.mrf.mxu3 }
 0x117   : > { %1999 = vst [vmem:[%s2571_s1 + $0x98] sm:$0xff] %v1919_v0   ;;  %v797_v4 = vpop.f32.mrf.mxu0  ;;  %v837_v5 = vpop.f32.mrf.mxu1  ;;  %v1174_v12 = vmul.f32 %v2551_v42, %v875_v2  ;;  %v1190_v13 = vmul.f32 %v2551_v42, %v915_v3 }
 0x118   : > { %2007 = vst [vmem:[%s2571_s1 + $0xd8] sm:$0xff] %v1959_v1   ;;  %v1143_v8 = vmul.f32 %v2551_v42, %v797_v4  ;;  %v1159_v9 = vmul.f32 %v2551_v42, %v837_v5 }
 0x119   : > { %v1242_v22 = vadd.f32 %v2554_v44, %v1174_v12  ;;  %v1258_v23 = vadd.f32 %v2554_v44, %v1190_v13 }
 0x11a   : > { %v1211_v10 = vadd.f32 %v2554_v44, %v1143_v8  ;;  %v1227_v11 = vadd.f32 %v2554_v44, %v1159_v9 }
 0x11b   : > { %v1306_v30 = vmax.f32 %v1242_v22, 0.0  ;;  %v1322_v31 = vmax.f32 %v1258_v23, 0.0 }
 0x11c   : > { %v1275_v16 = vmax.f32 %v1211_v10, 0.0  ;;  %v1291_v17 = vmax.f32 %v1227_v11, 0.0 }
 0x11e   : > { %v1844_v18 = vpack.c.bf16 %v1275_v16, %v1274_v14  ;;  %v1884_v19 = vpack.c.bf16 %v1291_v17, %v1290_v15  ;;  %v877_v20 = vpop.f32.mrf.mxu2  ;;  %v917_v21 = vpop.f32.mrf.mxu3 }
 0x11f   : > { %v1175_v24 = vmul.f32 %v2551_v42, %v877_v20  ;;  %v1191_v25 = vmul.f32 %v2551_v42, %v917_v21  ;;  %v800_v26 = vpop.f32.mrf.mxu0  ;;  %v840_v27 = vpop.f32.mrf.mxu1 }
 0x120   : > { %1984 = vst [vmem:[%s2571_s1 + $0x20] sm:$0xff] %v1844_v18   ;;  %v1144_v34 = vmul.f32 %v2551_v42, %v800_v26  ;;  %v1160_v35 = vmul.f32 %v2551_v42, %v840_v27 }
 0x121   : > { %1992 = vst [vmem:[%s2571_s1 + $0x60] sm:$0xff] %v1884_v19   ;;  %v1243_v28 = vadd.f32 %v2554_v44, %v1175_v24  ;;  %v1259_v29 = vadd.f32 %v2554_v44, %v1191_v25 }
 0x122   : > { %v1212_v43 = vadd.f32 %v2554_v44, %v1144_v34  ;;  %v1228_v45 = vadd.f32 %v2554_v44, %v1160_v35 }
 0x123   : > { %v1307_v32 = vmax.f32 %v1243_v28, 0.0  ;;  %v1323_v33 = vmax.f32 %v1259_v29, 0.0 }
 0x124   : > { %v1276_v52 = vmax.f32 %v1212_v43, 0.0  ;;  %v1292_v53 = vmax.f32 %v1228_v45, 0.0 }
 0x125   : > { %v1924_v36 = vpack.c.bf16 %v1307_v32, %v1306_v30  ;;  %v1964_v37 = vpack.c.bf16 %v1323_v33, %v1322_v31 }
 0x126   : > { %v880_v38 = vpop.f32.mrf.mxu2  ;;  %v920_v39 = vpop.f32.mrf.mxu3 }
 0x127   : > { %2000 = vst [vmem:[%s2571_s1 + $0xa0] sm:$0xff] %v1924_v36   ;;  %v802_v40 = vpop.f32.mrf.mxu0  ;;  %v842_v41 = vpop.f32.mrf.mxu1  ;;  %v1176_v50 = vmul.f32 %v2551_v42, %v880_v38  ;;  %v1192_v51 = vmul.f32 %v2551_v42, %v920_v39 }
 0x128   : > { %2008 = vst [vmem:[%s2571_s1 + $0xe0] sm:$0xff] %v1964_v37   ;;  %v1145_v46 = vmul.f32 %v2551_v42, %v802_v40  ;;  %v1161_v47 = vmul.f32 %v2551_v42, %v842_v41 }
 0x129   : > { %v1244_v60 = vadd.f32 %v2554_v44, %v1176_v50  ;;  %v1260_v61 = vadd.f32 %v2554_v44, %v1192_v51 }
 0x12a   : > { %v1213_v48 = vadd.f32 %v2554_v44, %v1145_v46  ;;  %v1229_v49 = vadd.f32 %v2554_v44, %v1161_v47 }
 0x12b   : > { %v1308_v4 = vmax.f32 %v1244_v60, 0.0  ;;  %v1324_v5 = vmax.f32 %v1260_v61, 0.0 }
 0x12c   : > { %v1277_v54 = vmax.f32 %v1213_v48, 0.0  ;;  %v1293_v55 = vmax.f32 %v1229_v49, 0.0 }
 0x12e   : > { %v1849_v56 = vpack.c.bf16 %v1277_v54, %v1276_v52  ;;  %v1889_v57 = vpack.c.bf16 %v1293_v55, %v1292_v53  ;;  %v882_v58 = vpop.f32.mrf.mxu2  ;;  %v922_v59 = vpop.f32.mrf.mxu3 }
 0x12f   : > { %v1177_v62 = vmul.f32 %v2551_v42, %v882_v58  ;;  %v1193_v63 = vmul.f32 %v2551_v42, %v922_v59  ;;  %v805_v0 = vpop.f32.mrf.mxu0  ;;  %v845_v1 = vpop.f32.mrf.mxu1 }
 0x130   : > { %1985 = vst [vmem:[%s2571_s1 + $0x28] sm:$0xff] %v1849_v56   ;;  %v1146_v8 = vmul.f32 %v2551_v42, %v805_v0  ;;  %v1162_v9 = vmul.f32 %v2551_v42, %v845_v1 }
 0x131   : > { %1993 = vst [vmem:[%s2571_s1 + $0x68] sm:$0xff] %v1889_v57   ;;  %v1245_v2 = vadd.f32 %v2554_v44, %v1177_v62  ;;  %v1261_v3 = vadd.f32 %v2554_v44, %v1193_v63 }
 0x132   : > { %v1214_v16 = vadd.f32 %v2554_v44, %v1146_v8  ;;  %v1230_v17 = vadd.f32 %v2554_v44, %v1162_v9 }
 0x133   : > { %v1309_v6 = vmax.f32 %v1245_v2, 0.0  ;;  %v1325_v7 = vmax.f32 %v1261_v3, 0.0 }
 0x134   : > { %v1278_v24 = vmax.f32 %v1214_v16, 0.0  ;;  %v1294_v25 = vmax.f32 %v1230_v17, 0.0 }
 0x135   : > { %v1929_v10 = vpack.c.bf16 %v1309_v6, %v1308_v4  ;;  %v1969_v11 = vpack.c.bf16 %v1325_v7, %v1324_v5 }
 0x136   : > { %v885_v12 = vpop.f32.mrf.mxu2  ;;  %v925_v13 = vpop.f32.mrf.mxu3 }
 0x137   : > { %2001 = vst [vmem:[%s2571_s1 + $0xa8] sm:$0xff] %v1929_v10   ;;  %v807_v14 = vpop.f32.mrf.mxu0  ;;  %v847_v15 = vpop.f32.mrf.mxu1  ;;  %v1178_v22 = vmul.f32 %v2551_v42, %v885_v12  ;;  %v1194_v23 = vmul.f32 %v2551_v42, %v925_v13 }
 0x138   : > { %2009 = vst [vmem:[%s2571_s1 + $0xe8] sm:$0xff] %v1969_v11   ;;  %v1147_v18 = vmul.f32 %v2551_v42, %v807_v14  ;;  %v1163_v19 = vmul.f32 %v2551_v42, %v847_v15 }
 0x139   : > { %v1246_v32 = vadd.f32 %v2554_v44, %v1178_v22  ;;  %v1262_v33 = vadd.f32 %v2554_v44, %v1194_v23 }
 0x13a   : > { %v1215_v20 = vadd.f32 %v2554_v44, %v1147_v18  ;;  %v1231_v21 = vadd.f32 %v2554_v44, %v1163_v19 }
 0x13b   : > { %v1310_v40 = vmax.f32 %v1246_v32, 0.0  ;;  %v1326_v41 = vmax.f32 %v1262_v33, 0.0 }
 0x13c   : > { %v1279_v26 = vmax.f32 %v1215_v20, 0.0  ;;  %v1295_v27 = vmax.f32 %v1231_v21, 0.0 }
 0x13e   : > { %v1854_v28 = vpack.c.bf16 %v1279_v26, %v1278_v24  ;;  %v1894_v29 = vpack.c.bf16 %v1295_v27, %v1294_v25  ;;  %v887_v30 = vpop.f32.mrf.mxu2  ;;  %v927_v31 = vpop.f32.mrf.mxu3 }
 0x13f   : > { %v1179_v34 = vmul.f32 %v2551_v42, %v887_v30  ;;  %v1195_v35 = vmul.f32 %v2551_v42, %v927_v31  ;;  %v810_v36 = vpop.f32.mrf.mxu0  ;;  %v850_v37 = vpop.f32.mrf.mxu1 }
 0x140   : > { %1986 = vst [vmem:[%s2571_s1 + $0x30] sm:$0xff] %v1854_v28   ;;  %v1148_v46 = vmul.f32 %v2551_v42, %v810_v36  ;;  %v1164_v47 = vmul.f32 %v2551_v42, %v850_v37 }
 0x141   : > { %1994 = vst [vmem:[%s2571_s1 + $0x70] sm:$0xff] %v1894_v29   ;;  %v1247_v38 = vadd.f32 %v2554_v44, %v1179_v34  ;;  %v1263_v39 = vadd.f32 %v2554_v44, %v1195_v35 }
 0x142   : > { %v1216_v54 = vadd.f32 %v2554_v44, %v1148_v46  ;;  %v1232_v55 = vadd.f32 %v2554_v44, %v1164_v47 }
 0x143   : > { %v1311_v43 = vmax.f32 %v1247_v38, 0.0  ;;  %v1327_v45 = vmax.f32 %v1263_v39, 0.0 }
 0x144   : > { %v1280_v62 = vmax.f32 %v1216_v54, 0.0  ;;  %v1296_v63 = vmax.f32 %v1232_v55, 0.0 }
 0x145   : > { %v1934_v48 = vpack.c.bf16 %v1311_v43, %v1310_v40  ;;  %v1974_v49 = vpack.c.bf16 %v1327_v45, %v1326_v41 }
 0x146   : > { %v890_v50 = vpop.f32.mrf.mxu2  ;;  %v930_v51 = vpop.f32.mrf.mxu3 }
 0x147   : > { %2002 = vst [vmem:[%s2571_s1 + $0xb0] sm:$0xff] %v1934_v48   ;;  %v812_v52 = vpop.f32.mrf.mxu0  ;;  %v852_v53 = vpop.f32.mrf.mxu1  ;;  %v1180_v60 = vmul.f32 %v2551_v42, %v890_v50  ;;  %v1196_v61 = vmul.f32 %v2551_v42, %v930_v51 }
 0x148   : > { %2010 = vst [vmem:[%s2571_s1 + $0xf0] sm:$0xff] %v1974_v49   ;;  %v1149_v56 = vmul.f32 %v2551_v42, %v812_v52  ;;  %v1165_v57 = vmul.f32 %v2551_v42, %v852_v53 }
 0x149   : > { %v1248_v6 = vadd.f32 %v2554_v44, %v1180_v60  ;;  %v1264_v7 = vadd.f32 %v2554_v44, %v1196_v61 }
 0x14a   : > { %v1217_v58 = vadd.f32 %v2554_v44, %v1149_v56  ;;  %v1233_v59 = vadd.f32 %v2554_v44, %v1165_v57 }
 0x14b   : > { %v1312_v12 = vmax.f32 %v1248_v6, 0.0  ;;  %v1328_v13 = vmax.f32 %v1264_v7, 0.0 }
 0x14c   : > { %v1281_v0 = vmax.f32 %v1217_v58, 0.0  ;;  %v1297_v1 = vmax.f32 %v1233_v59, 0.0 }
 0x14e   : > { %v1859_v2 = vpack.c.bf16 %v1281_v0, %v1280_v62  ;;  %v1899_v3 = vpack.c.bf16 %v1297_v1, %v1296_v63  ;;  %v892_v4 = vpop.f32.mrf.mxu2  ;;  %v932_v5 = vpop.f32.mrf.mxu3 }
 0x14f   : > { %v1181_v8 = vmul.f32 %v2551_v42, %v892_v4  ;;  %v1197_v9 = vmul.f32 %v2551_v42, %v932_v5 }
 0x150   : > { %1987 = vst [vmem:[%s2571_s1 + $0x38] sm:$0xff] %v1859_v2  }
 0x151   : > { %1995 = vst [vmem:[%s2571_s1 + $0x78] sm:$0xff] %v1899_v3   ;;  %v1249_v10 = vadd.f32 %v2554_v44, %v1181_v8  ;;  %v1265_v11 = vadd.f32 %v2554_v44, %v1197_v9 }
 0x153   : > { %v1313_v14 = vmax.f32 %v1249_v10, 0.0  ;;  %v1329_v42 = vmax.f32 %v1265_v11, 0.0 }
 0x155   : > { %v1939_v15 = vpack.c.bf16 %v1313_v14, %v1312_v12  ;;  %v1979_v16 = vpack.c.bf16 %v1329_v42, %v1328_v13 }
 0x157   : > { %2003 = vst [vmem:[%s2571_s1 + $0xb8] sm:$0xff] %v1939_v15  }
 0x158   : > { %2011 = vst [vmem:[%s2571_s1 + $0xf8] sm:$0xff] %v1979_v16  }
 0x159   : > { %2282 = shalt.err (!%p2279_p12)
}
 0x15a   : > { %s2352_s6 = smov 64   ;;  %s2353_s7 = smov 4  }
 0x15b   : > { %2050 = dma.vmem_to_hbm [thread:$0]  (%p2476_p3), %s1473_s18, 4096, %s1475_s11, %s1459_s12, %s2352_s6, %s2352_s6, %s2353_s7  }
 0x15c PF: > { %p2077_p13 = scmp.ge.s32.totalorder %s2345_s20, 2  ;;  %s1489_s13 = sand.u32 1, %s2325_s15  }
 0x15d   : > { %s1490_s8 = scalar_lea.sflag [#allocation5], %s1489_s13 }
 0x15e   : > { %p2067_p0 = pnand %p2077_p13, %p2428_p6 }
 0x160   : > { %p2068_p5 = pneg %p2067_p0 }
 0x162   : > { %2320 = dma.done.wait (%p2068_p5), %s1490_s8, 4096  }
 0x163   : > { %2322 = vsyncadd (%p2068_p5), %s1490_s8, 4294963200  ;;  %s22_s20 = sadd.s32 1, %s2345_s20   ;;  %s2778_s15 = smov %s2329_s16 }
 0x164   : > { %p19_p7 = scmp.ge.s32.totalorder %s22_s20, 101   ;;  %s2779_s16 = smov %s2333_s17 }
 0x165   : > { %s2780_s17 = smov %s2485_s14  ;;  %s2781_s18 = smov %s2341_s19 }
 0x166   : > { %s2782_s19 = smov %s2784_s29  ;;  %21 = sbr.rel (!%p19_p7) target bundleno = 11 (0xb), region = 104 }
 0x16b   :  { %1496 = vsyncpa [#allocation4], 1 }
 0x16c   :  { %1498 = vsyncpa [#allocation4 + $0x1], 1 }
 0x16d   :  { %1499 = vsyncpa [#allocation7], 1 }
 0x16e   :  { %1500 = vsyncpa [#allocation10], 1 }
 0x16f   :  { %1501 = vsyncpa [#allocation5], 1 }
 0x170   :  { %1503 = vsyncpa [#allocation5 + $0x1], 1 }

</bundles_post_ra>
